<compile_context>
chip_gen: v5e
topology: v5e:2x2
jax: 0.10.0
libtpu: 0.0.40
codegen_flags: <defaults>
</compile_context>

<pallas_src>
import functools
import math
from dataclasses import dataclass
from typing import Optional

import jax
import jax.numpy as jnp
from jax import lax
from jax.experimental import pallas as pl
from jax.experimental.pallas import tpu as pltpu


# ----------------------------- config ---------------------------------------

@dataclass
class Config:
    n_embd: int = 32
    n_head: int = 4
    head_dim: int = 8
    block_size: int = 64
    protect_bos_token: bool = True
    prevent_from_masking_myself: bool = True
    hard_pruning_constant: Optional[float] = None


MIN_CONTEXT_FOR_PRUNING = 256
FULL_PRUNING_CONTEXT = 1024


def get_pruning_ratio(cfg, context_length):
    if cfg.hard_pruning_constant is not None:
        return cfg.hard_pruning_constant
    if context_length < MIN_CONTEXT_FOR_PRUNING:
        return 1.0
    if context_length >= FULL_PRUNING_CONTEXT:
        return 0.2
    progress = (context_length - MIN_CONTEXT_FOR_PRUNING) / (
        FULL_PRUNING_CONTEXT - MIN_CONTEXT_FOR_PRUNING)
    return 0.5 - 0.3 * progress


# ----------------------------- fused kernel ----------------------------------

def _fused_selective_attn_kernel(x_ref, w_attn_ref, b_attn_ref, w_proj_ref, b_proj_ref,
                                 y_ref, *, n_head, head_dim, scale,
                                 protect_bos, prevent_self):
    f32 = jnp.float32
    T = x_ref.shape[1]
    HD = n_head * head_dim
    neg_inf = jnp.float32(-jnp.inf)

    # ---- c_attn: bf16 operands on the MXU, f32 accumulate + bias epilogue ----
    x = x_ref[0]
    if x.dtype != jnp.bfloat16:
        x = x.astype(jnp.bfloat16)
    qkv = jnp.dot(x, w_attn_ref[...], preferred_element_type=f32)
    qkv = qkv + b_attn_ref[...].astype(f32)                      # (T, 3*H*D)

    # torch column order is q|k|v with head-major columns inside each block, so these
    # reshapes are layout-exact (no column permutation needed).
    q = qkv[:, :HD].reshape(T, n_head, head_dim) * scale         # scale folded into q
    k = qkv[:, HD:2 * HD].reshape(T, n_head, head_dim)
    v = qkv[:, 2 * HD:].reshape(T, n_head, head_dim)

    # ---- all heads' QK^T in one batched dot_general (batch dim = H) ----
    att = jnp.einsum("qhd,khd->hqk", q, k, preferred_element_type=f32)  # (H, T, T)

    row = lax.broadcasted_iota(jnp.int32, (T, T), 0)              # query index
    col = lax.broadcasted_iota(jnp.int32, (T, T), 1)              # key index
    causal = col <= row
    att = jnp.where(causal[None], att, neg_inf)

    # ---- selection scores from head 0 (relu(-inf) == 0 covers the causal mask) ----
    S = jnp.maximum(att[0], 0.0)
    if protect_bos:
        S = jnp.where(col == 0, 0.0, S)        # S_masked[..., 1:] = S[..., 1:]
    if prevent_self:
        S = jnp.where(col == row, 0.0, S)      # S *= (1 - eye(T))

    # FF[i, j] = sum_{i' < i} S[i', j]  (torch roll + cumsum) as one MXU matmul.
    # TODO(synk): for block_size >> 256 stream this as a key-tiled running column sum
    # (flash-style) instead of the O(T^3) matmul / extra (T,T) f32 buffer.
    strict_lower = (col < row).astype(f32)
    FF = jnp.dot(strict_lower, S, preferred_element_type=f32)     # (T, T)

    att = att - FF[None]

    # ---- softmax (EUP exp + approx reciprocal; every causal row keeps its diagonal) ----
    m = jnp.max(att, axis=-1, keepdims=True)
    p = jnp.exp(att - m)
    p = p * pl.reciprocal(jnp.sum(p, axis=-1, keepdims=True), approx=True)

    # ---- att @ v for all heads, written as one lane-dense (T, H*D) slab ----
    y = jnp.einsum("hqk,khd->qhd", p, v, preferred_element_type=f32)
    y = y.reshape(T, HD)      # == torch y.transpose(1, 2).contiguous().view(B, T, H*D)

    # ---- c_proj (bf16 MXU, f32 epilogue), single store ----
    out = jnp.dot(y.astype(jnp.bfloat16), w_proj_ref[...], preferred_element_type=f32)
    out = out + b_proj_ref[...].astype(f32)
    y_ref[0] = out.astype(y_ref.dtype)


# ----------------------------- module forward --------------------------------

def init_params(key, cfg, param_dtype=jnp.bfloat16):
    HD = cfg.n_head * cfg.head_dim
    k1, k2, k3, k4 = jax.random.split(key, 4)

    def uniform(k, shape, fan_in):
        bound = 1.0 / math.sqrt(fan_in)
        return jax.random.uniform(k, shape, jnp.float32, -bound, bound)

    # weights stored as (in, out) == transpose of torch nn.Linear's (out, in)
    w_attn = uniform(k1, (cfg.n_embd, 3 * HD), cfg.n_embd).astype(param_dtype)
    b_attn = uniform(k2, (3 * HD,), cfg.n_embd)
    w_proj = uniform(k3, (HD, cfg.n_embd), HD).astype(param_dtype)
    b_proj = uniform(k4, (cfg.n_embd,), HD)
    return w_attn, b_attn, w_proj, b_proj


def causal_selective_self_attention_forward(x, params, cfg):
    """x: (B, T, n_embd) -> (y, None), matching the torch forward (no-cache path)."""
    B, T, C = x.shape
    assert C == cfg.n_embd and T <= cfg.block_size
    w_attn, b_attn, w_proj, b_proj = params
    HD = cfg.n_head * cfg.head_dim

    if get_pruning_ratio(cfg, T) < 1.0:
        # TODO(synk): pruned-context branch (argsort top-k keep mask + context cache) has
        # no clean Pallas equivalent and is not implemented.
        raise NotImplementedError("pruning path not implemented")

    kernel = functools.partial(
        _fused_selective_attn_kernel,
        n_head=cfg.n_head,
        head_dim=cfg.head_dim,
        scale=1.0 / math.sqrt(cfg.head_dim),
        protect_bos=cfg.protect_bos_token,
        prevent_self=cfg.prevent_from_masking_myself,
    )

    b_attn2 = b_attn.reshape(1, 3 * HD).astype(jnp.float32)
    b_proj2 = b_proj.reshape(1, C).astype(jnp.float32)

    flops_per_b = (2 * T * C * 3 * HD                              # c_attn
                   + 2 * 2 * cfg.n_head * T * T * cfg.head_dim     # qk^T and att@v
                   + 2 * T * T * T                                 # FF matmul
                   + 2 * T * HD * C)                               # c_proj
    cost = pl.CostEstimate(
        flops=B * flops_per_b,
        transcendentals=B * cfg.n_head * T * T,
        bytes_accessed=int(x.nbytes + w_attn.nbytes + b_attn2.nbytes
                           + w_proj.nbytes + b_proj2.nbytes + B * T * C * 4),
    )

    y = pl.pallas_call(
        kernel,
        out_shape=jax.ShapeDtypeStruct((B, T, C), jnp.float32),
        grid=(B,),
        in_specs=[
            pl.BlockSpec((1, T, C), lambda b: (b, 0, 0)),          # per-batch activation
            pl.BlockSpec((C, 3 * HD), lambda b: (0, 0)),           # VMEM-resident weights
            pl.BlockSpec((1, 3 * HD), lambda b: (0, 0)),
            pl.BlockSpec((HD, C), lambda b: (0, 0)),
            pl.BlockSpec((1, C), lambda b: (0, 0)),
        ],
        out_specs=pl.BlockSpec((1, T, C), lambda b: (b, 0, 0)),
        compiler_params=pltpu.CompilerParams(
            dimension_semantics=("parallel",),
            vmem_limit_bytes=32 * 1024 * 1024,
        ),
        cost_estimate=cost,
    )(x, w_attn, b_attn2, w_proj, b_proj2)
    return y, None


# ----------------------------- pure-JAX reference -----------------------------

def reference_forward(x, params, cfg):
    B, T, C = x.shape
    w_attn, b_attn, w_proj, b_proj = params
    HD = cfg.n_head * cfg.head_dim

    def lin(x2d, w, b):
        return jnp.dot(x2d.astype(w.dtype), w, preferred_element_type=jnp.float32) + b

    qkv = lin(x.reshape(B * T, C), w_attn, b_attn).reshape(B, T, 3 * HD)
    q, k, v = jnp.split(qkv, 3, axis=-1)
    q = q.reshape(B, T, cfg.n_head, cfg.head_dim).transpose(0, 2, 1, 3)
    k = k.reshape(B, T, cfg.n_head, cfg.head_dim).transpose(0, 2, 1, 3)
    v = v.reshape(B, T, cfg.n_head, cfg.head_dim).transpose(0, 2, 1, 3)

    att = jnp.einsum("bhqd,bhkd->bhqk", q, k) * (1.0 / math.sqrt(cfg.head_dim))
    causal = jnp.tril(jnp.ones((T, T), dtype=bool))
    att = jnp.where(causal[None, None], att, -jnp.inf)

    S = jnp.maximum(att[:, 0], 0.0)
    if cfg.protect_bos_token:
        S = S.at[..., 0].set(0.0)
    if cfg.prevent_from_masking_myself:
        S = S * (1.0 - jnp.eye(T, dtype=S.dtype))
    S_shifted = jnp.roll(S, 1, axis=-2).at[:, 0, :].set(0.0)
    FF = jnp.cumsum(S_shifted, axis=-2)[:, None]
    att = att - FF

    att = jax.nn.softmax(att, axis=-1)
    y = jnp.einsum("bhqk,bhkd->bhqd", att, v)
    y = y.transpose(0, 2, 1, 3).reshape(B, T, HD)
    y = lin(y.reshape(B * T, HD), w_proj, b_proj).reshape(B, T, cfg.n_embd)
    return y


# ----------------------------- test ------------------------------------------

if __name__ == "__main__":
    cfg = Config(n_embd=32, n_head=4, head_dim=8, block_size=64,
                 protect_bos_token=True, prevent_from_masking_myself=True)
    B, T = 2, 8   # T < 256 -> pruning_ratio = 1.0 (no-pruning branch of the module)

    key = jax.random.PRNGKey(0)
    kx, kp = jax.random.split(key)
    x = jax.random.normal(kx, (B, T, cfg.n_embd), jnp.float32)
    params = init_params(kp, cfg)

    y, _ = causal_selective_self_attention_forward(x, params, cfg)
    jax.block_until_ready(y)

    y_ref = reference_forward(x, params, cfg)
    assert y.shape == (B, T, cfg.n_embd)
    assert bool(jnp.all(jnp.isfinite(y)))
    # bf16 MXU operands + approx-reciprocal softmax -> relaxed tolerance vs the f32 reference.
    assert jnp.allclose(y, y_ref, atol=5e-2, rtol=5e-2), (
        f"max abs err {float(jnp.max(jnp.abs(y - y_ref)))}")

    print("KERNEL_OK")
</pallas_src>

<mosaic_0001>
module attributes {stable_mosaic.version = 11 : i64} {
  func.func @_fused_selective_attn_kernel(%arg0: i32, %arg1: memref<1x8x32xf32, #tpu.memory_space<vmem>>, %arg2: memref<32x96xbf16, #tpu.memory_space<vmem>>, %arg3: memref<1x96xf32, #tpu.memory_space<vmem>>, %arg4: memref<32x32xbf16, #tpu.memory_space<vmem>>, %arg5: memref<1x32xf32, #tpu.memory_space<vmem>>, %arg6: memref<1x8x32xf32, #tpu.memory_space<vmem>>) attributes {dimension_semantics = [#tpu.dimension_semantics<parallel>], iteration_bounds = array<i64: 2>, scalar_prefetch = 0 : i64, scratch_operands = 0 : i64, tpu.core_type = #tpu.core_type<tc>, window_params = [{transform_indices = @transform_0, window_bounds = array<i64: 1, 8, 32>}, {pipeline_mode = #tpu.pipeline_mode<synchronous>, transform_indices = @transform_1, window_bounds = array<i64: 32, 96>}, {pipeline_mode = #tpu.pipeline_mode<synchronous>, transform_indices = @transform_2, window_bounds = array<i64: 1, 96>}, {pipeline_mode = #tpu.pipeline_mode<synchronous>, transform_indices = @transform_3, window_bounds = array<i64: 32, 32>}, {pipeline_mode = #tpu.pipeline_mode<synchronous>, transform_indices = @transform_4, window_bounds = array<i64: 1, 32>}, {transform_indices = @transform_5, window_bounds = array<i64: 1, 8, 32>}]} {
    %c0 = arith.constant 0 : index
    %c0_0 = arith.constant 0 : index
    %c0_1 = arith.constant 0 : index
    %0 = vector.load %arg1[%c0, %c0_0, %c0_1] : memref<1x8x32xf32, #tpu.memory_space<vmem>>, vector<1x8x32xf32>
    %1 = vector.shape_cast %0 : vector<1x8x32xf32> to vector<8x32xf32>
    %2 = arith.truncf %1 : vector<8x32xf32> to vector<8x32xbf16>
    %c0_2 = arith.constant 0 : index
    %c0_3 = arith.constant 0 : index
    %3 = vector.load %arg2[%c0_2, %c0_3] : memref<32x96xbf16, #tpu.memory_space<vmem>>, vector<32x96xbf16>
    %cst = arith.constant dense<0.000000e+00> : vector<8x96xf32>
    %4 = tpu.matmul %2, %3, %cst {dimension_numbers = #tpu.dot_dimension_numbers<[1], [0], [0], [1], [0, 0, 1, 1], [], []>} : vector<8x32xbf16>, vector<32x96xbf16>, vector<8x96xf32> -> vector<8x96xf32>
    %c0_4 = arith.constant 0 : index
    %c0_5 = arith.constant 0 : index
    %5 = vector.load %arg3[%c0_4, %c0_5] : memref<1x96xf32, #tpu.memory_space<vmem>>, vector<1x96xf32>
    %6 = vector.broadcast %5 : vector<1x96xf32> to vector<8x96xf32>
    %7 = arith.addf %4, %6 : vector<8x96xf32>
    %8 = vector.extract_strided_slice %7 {offsets = [0, 0], sizes = [8, 32], strides = [1, 1]} : vector<8x96xf32> to vector<8x32xf32>
    %9 = vector.shape_cast %8 : vector<8x32xf32> to vector<8x4x8xf32>
    %cst_6 = arith.constant 0.353553385 : f32
    %10 = vector.broadcast %cst_6 : f32 to vector<8x4x8xf32>
    %11 = arith.mulf %9, %10 : vector<8x4x8xf32>
    %12 = vector.extract_strided_slice %7 {offsets = [0, 32], sizes = [8, 32], strides = [1, 1]} : vector<8x96xf32> to vector<8x32xf32>
    %13 = vector.shape_cast %12 : vector<8x32xf32> to vector<8x4x8xf32>
    %14 = vector.extract_strided_slice %7 {offsets = [0, 64], sizes = [8, 32], strides = [1, 1]} : vector<8x96xf32> to vector<8x32xf32>
    %15 = vector.shape_cast %14 : vector<8x32xf32> to vector<8x4x8xf32>
    "tpu.trace_start"() <{level = 10 : i32, message = "qhd,khd->hqk"}> : () -> ()
    %cst_7 = arith.constant dense<0.000000e+00> : vector<4x8x8xf32>
    %16 = tpu.matmul %11, %13, %cst_7 {dimension_numbers = #tpu.dot_dimension_numbers<[2], [2], [0], [0], [0, 1, 0, 0, 1, 0], [1], [1]>} : vector<8x4x8xf32>, vector<8x4x8xf32>, vector<4x8x8xf32> -> vector<4x8x8xf32>
    "tpu.trace_stop"() : () -> ()
    %17 = tpu.iota {dimensions = array<i32: 0>} : vector<8x8xi32>
    %18 = tpu.iota {dimensions = array<i32: 1>} : vector<8x8xi32>
    %19 = arith.cmpi sle, %18, %17 : vector<8x8xi32>
    %20 = vector.shape_cast %19 : vector<8x8xi1> to vector<1x8x8xi1>
    %cst_8 = arith.constant 0xFF800000 : f32
    %21 = vector.shape_cast %20 : vector<1x8x8xi1> to vector<1x8x8xi1>
    %22 = vector.broadcast %21 : vector<1x8x8xi1> to vector<4x8x8xi1>
    %23 = vector.broadcast %cst_8 : f32 to vector<4x8x8xf32>
    %24 = arith.select %22, %16, %23 : vector<4x8x8xi1>, vector<4x8x8xf32>
    %25 = vector.extract_strided_slice %24 {offsets = [0, 0, 0], sizes = [1, 8, 8], strides = [1, 1, 1]} : vector<4x8x8xf32> to vector<1x8x8xf32>
    %26 = vector.shape_cast %25 : vector<1x8x8xf32> to vector<8x8xf32>
    %cst_9 = arith.constant 0.000000e+00 : f32
    %27 = vector.broadcast %cst_9 : f32 to vector<8x8xf32>
    %28 = arith.maximumf %26, %27 : vector<8x8xf32>
    %c0_i32 = arith.constant 0 : i32
    %29 = vector.broadcast %c0_i32 : i32 to vector<8x8xi32>
    %30 = arith.cmpi eq, %18, %29 : vector<8x8xi32>
    %cst_10 = arith.constant 0.000000e+00 : f32
    %31 = vector.broadcast %cst_10 : f32 to vector<8x8xf32>
    %32 = arith.select %30, %31, %28 : vector<8x8xi1>, vector<8x8xf32>
    %33 = arith.cmpi eq, %18, %17 : vector<8x8xi32>
    %cst_11 = arith.constant 0.000000e+00 : f32
    %34 = vector.broadcast %cst_11 : f32 to vector<8x8xf32>
    %35 = arith.select %33, %34, %32 : vector<8x8xi1>, vector<8x8xf32>
    %36 = arith.cmpi slt, %18, %17 : vector<8x8xi32>
    %37 = arith.extui %36 : vector<8x8xi1> to vector<8x8xi32>
    %38 = arith.sitofp %37 : vector<8x8xi32> to vector<8x8xf32>
    %cst_12 = arith.constant dense<0.000000e+00> : vector<8x8xf32>
    %39 = tpu.matmul %38, %35, %cst_12 {dimension_numbers = #tpu.dot_dimension_numbers<[1], [0], [0], [1], [0, 0, 1, 1], [], []>} : vector<8x8xf32>, vector<8x8xf32>, vector<8x8xf32> -> vector<8x8xf32>
    %40 = vector.shape_cast %39 : vector<8x8xf32> to vector<1x8x8xf32>
    %41 = vector.broadcast %40 : vector<1x8x8xf32> to vector<4x8x8xf32>
    %42 = arith.subf %24, %41 : vector<4x8x8xf32>
    %cst_13 = arith.constant dense<0xFF800000> : vector<4x8xf32>
    %43 = vector.multi_reduction <maximumf>, %42, %cst_13 [2] : vector<4x8x8xf32> to vector<4x8xf32>
    %44 = vector.shape_cast %43 : vector<4x8xf32> to vector<4x8x1xf32>
    %45 = vector.broadcast %44 : vector<4x8x1xf32> to vector<4x8x8xf32>
    %46 = arith.subf %42, %45 : vector<4x8x8xf32>
    %47 = math.exp %46 : vector<4x8x8xf32>
    %cst_14 = arith.constant dense<0.000000e+00> : vector<4x8xf32>
    %48 = vector.multi_reduction <add>, %47, %cst_14 [2] : vector<4x8x8xf32> to vector<4x8xf32>
    %49 = vector.shape_cast %48 : vector<4x8xf32> to vector<4x8x1xf32>
    %50 = tpu.reciprocal %49 {approx = true} : vector<4x8x1xf32> -> vector<4x8x1xf32>
    %51 = vector.broadcast %50 : vector<4x8x1xf32> to vector<4x8x8xf32>
    %52 = arith.mulf %47, %51 : vector<4x8x8xf32>
    "tpu.trace_start"() <{level = 10 : i32, message = "hqk,khd->qhd"}> : () -> ()
    %cst_15 = arith.constant dense<0.000000e+00> : vector<4x8x8xf32>
    %53 = tpu.matmul %15, %52, %cst_15 {dimension_numbers = #tpu.dot_dimension_numbers<[0], [2], [2], [1], [0, 1, 0, 2, 1, 1], [1], [0]>} : vector<8x4x8xf32>, vector<4x8x8xf32>, vector<4x8x8xf32> -> vector<4x8x8xf32>
    %54 = tpu.transpose %53, [2, 0, 1] : vector<4x8x8xf32> -> vector<8x4x8xf32>
    "tpu.trace_stop"() : () -> ()
    %55 = vector.shape_cast %54 : vector<8x4x8xf32> to vector<8x32xf32>
    %56 = arith.truncf %55 : vector<8x32xf32> to vector<8x32xbf16>
    %c0_16 = arith.constant 0 : index
    %c0_17 = arith.constant 0 : index
    %57 = vector.load %arg4[%c0_16, %c0_17] : memref<32x32xbf16, #tpu.memory_space<vmem>>, vector<32x32xbf16>
    %cst_18 = arith.constant dense<0.000000e+00> : vector<8x32xf32>
    %58 = tpu.matmul %56, %57, %cst_18 {dimension_numbers = #tpu.dot_dimension_numbers<[1], [0], [0], [1], [0, 0, 1, 1], [], []>} : vector<8x32xbf16>, vector<32x32xbf16>, vector<8x32xf32> -> vector<8x32xf32>
    %c0_19 = arith.constant 0 : index
    %c0_20 = arith.constant 0 : index
    %59 = vector.load %arg5[%c0_19, %c0_20] : memref<1x32xf32, #tpu.memory_space<vmem>>, vector<1x32xf32>
    %60 = vector.broadcast %59 : vector<1x32xf32> to vector<8x32xf32>
    %61 = arith.addf %58, %60 : vector<8x32xf32>
    %c0_21 = arith.constant 0 : index
    %c0_22 = arith.constant 0 : index
    %c0_23 = arith.constant 0 : index
    %62 = vector.load %arg6[%c0_21, %c0_22, %c0_23] : memref<1x8x32xf32, #tpu.memory_space<vmem>>, vector<1x8x32xf32>
    %63 = vector.shape_cast %62 : vector<1x8x32xf32> to vector<8x32xf32>
    %64 = vector.shape_cast %61 : vector<8x32xf32> to vector<1x8x32xf32>
    tpu.vector_store %arg6[%c0_21, %c0_22, %c0_23], %64 {strides = array<i32>} : memref<1x8x32xf32, #tpu.memory_space<vmem>>, vector<1x8x32xf32>,
    return
  }
  func.func @transform_0(%arg0: i32) -> (i32, i32, i32) {
    %c0_i32 = arith.constant 0 : i32
    %c0_i32_0 = arith.constant 0 : i32
    %c0_i32_1 = arith.constant 0 : i32
    return %arg0, %c0_i32, %c0_i32_0 : i32, i32, i32
  }
  func.func @transform_1(%arg0: i32) -> (i32, i32) {
    %c0_i32 = arith.constant 0 : i32
    %c0_i32_0 = arith.constant 0 : i32
    %c0_i32_1 = arith.constant 0 : i32
    return %c0_i32, %c0_i32_0 : i32, i32
  }
  func.func @transform_2(%arg0: i32) -> (i32, i32) {
    %c0_i32 = arith.constant 0 : i32
    %c0_i32_0 = arith.constant 0 : i32
    %c0_i32_1 = arith.constant 0 : i32
    return %c0_i32, %c0_i32_0 : i32, i32
  }
  func.func @transform_3(%arg0: i32) -> (i32, i32) {
    %c0_i32 = arith.constant 0 : i32
    %c0_i32_0 = arith.constant 0 : i32
    %c0_i32_1 = arith.constant 0 : i32
    return %c0_i32, %c0_i32_0 : i32, i32
  }
  func.func @transform_4(%arg0: i32) -> (i32, i32) {
    %c0_i32 = arith.constant 0 : i32
    %c0_i32_0 = arith.constant 0 : i32
    %c0_i32_1 = arith.constant 0 : i32
    return %c0_i32, %c0_i32_0 : i32, i32
  }
  func.func @transform_5(%arg0: i32) -> (i32, i32, i32) {
    %c0_i32 = arith.constant 0 : i32
    %c0_i32_0 = arith.constant 0 : i32
    %c0_i32_1 = arith.constant 0 : i32
    return %arg0, %c0_i32, %c0_i32_0 : i32, i32, i32
  }
}

</mosaic_0001>

<bundles_post_ra>
// kernel: tpu_custom_call.1
= control target key start
LH: loop header
LB: loop body
LE: loop exit
PB: predicated region body
PF: predicated region fallthrough
CT: control target
= control target key end

     0   :  { %10 = vsyncpa [#allocation3], 0  ;;  %s2084_s0 = inlined_call_operand.hbm [shape: f32[2,8,32], index: 0, kind: input, shape index: {}]   ;;  %s2085_s1 = inlined_call_operand.hbm [shape: bf16[32,96], index: 1, kind: input, shape index: {}]   ;;  %s2086_s2 = inlined_call_operand.vmem [shape: f32[1,96], index: 2, kind: input, shape index: {}]   ;;  %s2087_s3 = inlined_call_operand.hbm [shape: bf16[32,32], index: 3, kind: input, shape index: {}]   ;;  %s2088_s4 = inlined_call_operand.vmem [shape: f32[1,32], index: 4, kind: input, shape index: {}]   ;;  %s2089_s5 = inlined_call_operand.hbm [shape: f32[2,8,32], index: 5, kind: output, shape index: {}]  }
   0x1   :  { %12 = vsyncpa [#allocation3 + $0x1], 0 }
   0x2   :  { %13 = vsyncpa [#allocation6], 0 }
   0x3   :  { %14 = vsyncpa [#allocation4], 0 }
   0x4   :  { %16 = vsyncpa [#allocation4 + $0x1], 0  ;;  %s1785_s18 = smov 0   ;;  %s1787_s19 = smov 0  }
   0x5   :  { %s1789_s20 = smov 0   ;;  %s1791_s21 = smov 0  }
   0x6 LB: > { %s174_s24 = sshll.u32 %s2085_s1, 4  ;;  %s1809_s25 = sadd.s32 4294967295, %s1738_s21   ;;  %s1738_s21 = sphi %s1791_s21, %s2100_s21   ;;  %s1734_s20 = sphi %s1789_s20, %s2099_s20   ;;  %s1730_s19 = sphi %s1787_s19, %s2098_s19   ;;  %s1726_s18 = sphi %s1785_s18, %s2097_s18   ;;  %s175_s24 = int_to_ptr.hbm [resolvable:$true] %s174_s24 }
   0x7   : > { %p1412_p0 = scmp.ge.s32.totalorder %s1738_s21, 1  ;;  %p43_p1 = scmp.eq.s32.totalorder %s1809_s25, 0 }
   0x8   : > { %p163_p2 = scmp.lt.s32.totalorder %s1738_s21, 3  ;;  %s1740_s27 = smov [#allocation5]  }
   0x9   : > { %s176_s28 = sshll.u32 %s1740_s27, 4  ;;  %s191_s6 = sshll.u32 %s2087_s3, 4  ;;  %s177_s28 = int_to_ptr.vmem [resolvable:$true] %s176_s28  ;;  %s192_s6 = int_to_ptr.hbm [resolvable:$true] %s191_s6 }
   0xa   : > { %p1814_p3 = pnand %p1412_p0, %p163_p2  ;;  %s1741_s7 = smov [#allocation7]  }
   0xb   : > { %s193_s8 = sshll.u32 %s1741_s7, 4  ;;  %s1742_s9 = smov 64   ;;  %s194_s8 = int_to_ptr.vmem [resolvable:$true] %s193_s8 }
   0xc   : > { %p1478_p4 = pneg %p1814_p3  ;;  %s1743_s10 = smov 4  }
   0xd   : > { %s1411_s11 = sadd.s32 4294967294, %s1738_s21   ;;  %s1828_s12 = sadd.s32 1, %s1738_s21  }
   0xe   : > { %p1479_p6 = pnand %p1478_p4, %p43_p1  ;;  %s26_s13 = ssub.s32 %s1738_s21, %s1828_s12 }
   0xf   : > { %s29_s14 = sadd.s32 1, %s1734_s20  ;;  %p27_p7 = scmp.eq.s32.totalorder %s26_s13, 0 }
  0x10   : > { %1481 = dma.hbm_to_vmem [thread:$0]  (!%p1479_p6), %s175_s24, 256, %s177_s28, [#allocation6], %s1742_s9, %s1742_s9, %s1743_s10  }
  0x11   : > { %1484 = dma.hbm_to_vmem [thread:$0]  (!%p1479_p6), %s192_s6, 256, %s194_s8, [#allocation6], %s1742_s9, %s1742_s9, %s1743_s10  }
  0x12   : > { %p36_p8 = scmp.ne.s32.totalorder %s1734_s20, %s1730_s19  ;;  %p37_p9 = scmp.eq.s32.totalorder %s1738_s21, 0 }
  0x13   : > { %p42_p10 = scmp.ne.s32.totalorder %s1730_s19, %s1726_s18  ;;  %p150_p13 = scmp.eq.s32.totalorder %s1809_s25, 1 }
  0x14   : > { %s1839_s15 = scalar_select %p27_p7, %s1734_s20, %s29_s14  }
  0x15   : > { %p1841_p11 = por %p37_p9, %p36_p8  ;;  %p1847_p12 = por %p43_p1, %p42_p10 }
  0x16   : > { %p156_p0 = scmp.eq.s32.totalorder %s1411_s11, 1  ;;  %p1495_p2 = scmp.lt.s32.totalorder %s1738_s21, 2 }
  0x17   : > { %s210_s22 = sand.u32 1, %s1734_s20   ;;  %p1854_p4 = por %p150_p13, %p36_p8 }
  0x18   : > { %p1858_p6 = por %p156_p0, %p42_p10  ;;  %s1416_s27 = sshll.u32 %s210_s22, 3 }
  0x19   : > { %s1417_s28 = sshll.u32 %s1738_s21, 3  ;;  %s214_s7 = scalar_lea.vmem [#allocation2], %s1416_s27 }
  0x1a   : > { %s218_s6 = scalar_lea.hbm %s2084_s0, %s1417_s28  ;;  %s222_s8 = sshll.u32 %s214_s7, 4  ;;  %s223_s8 = int_to_ptr.vmem [resolvable:$true] %s222_s8 }
  0x1b   : > { %s220_s9 = sshll.u32 %s218_s6, 4  ;;  %p1868_p7 = pnand %p1495_p2, %p1841_p11  ;;  %s221_s9 = int_to_ptr.hbm [resolvable:$true] %s220_s9 }
  0x1c   : > { %s211_s11 = scalar_lea.sflag [#allocation3], %s210_s22  ;;  %s1638_s13 = sshra.s32 %s221_s9, 4  ;;  %s1639_s13 = int_to_ptr.hbm [resolvable:$true] %s1638_s13 }
  0x1d   : > { %s1640_s14 = scalar_lea.hbm %s1639_s13, 8  ;;  %p1642_p9 = pneg %p1868_p7 }
  0x1e   : > { %p1641_p8 = scmp.ne.s32.totalorder %s1639_s13, %s1640_s14  ;;  %s1645_s29 = scalar_lea.hbm %s2084_s0, 16 }
  0x1f   : > { %p1646_p11 = scmp.lt.s32.totalorder %s1639_s13, %s2084_s0  ;;  %p1647_p0 = scmp.lt.s32.totalorder %s1645_s29, %s1640_s14 }
  0x20   : > { %p1643_p10 = pnand %p1642_p9, %p1641_p8 }
  0x21   : > { %p1648_p2 = por %p1647_p0, %p1646_p11 }
  0x22   : > { %p1644_p13 = pneg %p1643_p10 }
  0x24   : > { %p1649_p5 = pnand %p1648_p2, %p1644_p13 }
  0x26   : > { %1652 = shalt.err (!%p1649_p5)
}
  0x27   : > { %1488 = dma.hbm_to_vmem [thread:$0]  (!%p1868_p7), %s221_s9, 128, %s223_s8, %s211_s11  }
  0x28   : > { %231 = sbr.rel (%p1814_p3) target bundleno = 1748 (0x6d4), region = 40  ;;  %s1885_s22 = sand.u32 (!%p1814_p3), 1, %s1730_s19  }
  0x29   : > { %s1419_s6 = sshll.u32 (!%p1814_p3), %s1885_s22, 3  ;;  %s234_s7 = scalar_lea.sflag (!%p1814_p3), [#allocation3], %s1885_s22 }
  0x2a   : > { %s237_s13 = scalar_lea.vmem (!%p1814_p3), [#allocation2], %s1419_s6 }
  0x2d   : > { %1713 = dma.done.wait (%p1847_p12), %s234_s7, 128  }
  0x2e   : > { %1715 = vsyncadd (%p1847_p12), %s234_s7, 4294967168 }
  0x2f   : > { %1717 = dma.done.wait (%p43_p1), [#allocation6], 512  }
  0x30   : > { %1719 = vsyncadd (%p43_p1), [#allocation6], 4294966784  ;;  %v1462_v0 = vld [vmem:[#allocation5 + $0x8] sm:$0xff]  ;;  %v1461_v1 = vld [vmem:[#allocation5] sm:$0xff]  ;;  %vm298_vm0 = vcmask 261120   ;;  %s1744_s17 = smov 104  }
  0x31   : > { %308 = vmatpush.bf16.msra.mxu0 %v1462_v0  ;;  %v276_v2 = vld [vmem:[%s237_s13] sm:$0xff]  ;;  %s1745_s9 = smov 120   ;;  %s1746_s10 = smov 96   ;;  %v1748_v8 = vmov 1983009808   ;;  %vm326_vm1 = vcmask 1047556  }
  0x32   : > { %v277_v3 = vpack.c.bf16 %v276_v2, %v276_v2  ;;  %v1560_v4 = vld [vmem:[%s2086_s2] ss:$0 sm:$0xff]  ;;  %s1747_s11 = smov 112   ;;  %v331_v9 = vunpack.c.l.s4 %v1748_v8  ;;  %v1749_v17 = vmov 1934713408   ;;  %vm586_vm2 = vcmask 64512  }
  0x33   : > { %v355_v18 = vunpack.c.l.s4 %v1749_v17  ;;  %s1751_s14 = smov 64   ;;  %s1752_s27 = smov 24   ;;  %vm1264_vm7 = vcmask 130048   ;;  %vm1266_vm8 = vcmask 195584  }
  0x34   : > { %v1918_v14 = vunpack.c.0.s8 %v331_v9  ;;  %s1753_s28 = smov 16   ;;  %s1754_s29 = smov 8  }
  0x35   : > { %309 = vmatpush.bf16.msra.mxu0 %v1461_v1  ;;  %v1929_v24 = vunpack.c.0.s8 %v355_v18  ;;  %s1458_s30 = sshll.u32 %s1809_s25, 3  ;;  %s1307_s25 = scalar_lea.sflag [#allocation4], %s1885_s22 }
  0x36   : > { %s1317_s13 = scalar_lea.hbm %s2089_s5, %s1458_s30 }
  0x38   : > { %1431 = vmatmul.msk.bf16.vlgmr.msra.gmra.mxu0 %vm298_vm0, %v277_v3 }
  0xb5   : > { %v311_v5 = vpop.f32.mrf.mxu0 }
  0xb6   : > { %v1903_v6 = vadd.f32 %v1560_v4, %v311_v5 }
  0xb8   : > { %322 = vrot.lane.b32.xlu1 %v1903_v6, %s1744_s17  ;;  %316 = vrot.lane.b32.xlu0 %v1903_v6, %s1745_s9  ;;  %v328_v20 = vrot.slane %v1903_v6, 4  ;;  %s274_s17 = scalar_lea.vmem [#allocation8], %s1419_s6  ;;  %s1688_s6 = scalar_lea.hbm %s2089_s5, 16 }
  0xb9   : > { %s1319_s9 = sshll.u32 %s274_s17, 4  ;;  %s1320_s9 = int_to_ptr.vmem [resolvable:$true] %s1319_s9 }
  0xbd   : > { %v313_v7 = vpop.f32.mrf.mxu0 }
  0xc0   : > { %446 = vrot.lane.b32.xlu1 %v1903_v6, %s1746_s10  ;;  %319 = vrot.lane.b32.xlu0 %v1903_v6, %s1747_s11 }
 0x12a   : > { %v1910_v10 = vpop.permute.xlu1 %322  ;;  %v1912_v11 = vpop.permute.xlu0 %316 }
 0x12b   : > { %v338_v12 = vrot.slane %v1910_v10, 4  ;;  %v340_v13 = vrot.slane %v1912_v11, 4  ;;  %452 = vrot.lane.b32.xlu1 %v1910_v10, %s1746_s10 }
 0x12d   : > { %v341_v15 = vsel %vm326_vm1, %v1910_v10, %v340_v13  ;;  %v339_v16 = vsel %vm326_vm1, %v338_v12, %v1912_v11 }
 0x12e   : > { %v349_v19 = vperm.slane %v341_v15, %v1918_v14  ;;  %v345_v21 = vperm.slane %v339_v16, %v1918_v14 }
 0x130   : > { %v362_v27 = vrot.slane %v349_v19, 4  ;;  %v350_v30 = vrot.slane %v345_v21, 4 }
 0x132   : > { %v447_v22 = vpop.permute.xlu1 %446  ;;  %v1927_v23 = vpop.permute.xlu0 %319 }
 0x133   : > { %v325_v25 = vrot.slane %v1927_v23, 4  ;;  %v329_v26 = vsel %vm326_vm1, %v1927_v23, %v328_v20  ;;  %458 = vxpose.xlu2.b32.start.end [1/1] (short) (narrow) %v447_v22, 8  ;;  %450 = vrot.lane.b32.xlu0 %v1927_v23, %s1746_s10 }
 0x134   : > { %v337_v28 = vperm.slane %v329_v26, %v1918_v14 }
 0x135   : > { %v327_v29 = vsel %vm326_vm1, %v325_v25, %v1903_v6 }
 0x136   : > { %v333_v31 = vperm.slane %v327_v29, %v1918_v14  ;;  %v363_v32 = vsel %vm326_vm1, %v362_v27, %v337_v28  ;;  %v364_v33 = vrot.slane %v337_v28, 4 }
 0x137   : > { %v369_v34 = vperm.slane %v363_v32, %v1929_v24 }
 0x138   : > { %v351_v35 = vsel %vm326_vm1, %v350_v30, %v333_v31  ;;  %v352_v36 = vrot.slane %v333_v31, 4  ;;  %v365_v37 = vsel %vm326_vm1, %v349_v19, %v364_v33 }
 0x139   : > { %v357_v38 = vperm.slane %v351_v35, %v1929_v24  ;;  %v373_v39 = vperm.slane %v365_v37, %v1929_v24  ;;  %v378_v40 = vrot.slane %v369_v34, 4  ;;  %v386_v50 = vmul.f32 0.35355338, %v369_v34 }
 0x13a   : > { %v353_v41 = vsel %vm326_vm1, %v345_v21, %v352_v36  ;;  %v679_v37 = vlaneseq }
 0x13b   : > { %v361_v42 = vperm.slane %v353_v41, %v1929_v24  ;;  %v374_v43 = vrot.slane %v357_v38, 4  ;;  %v380_v44 = vrot.slane %v373_v39, 4  ;;  %v388_v45 = vmul.f32 0.35355338, %v373_v39 }
 0x13c   : > { %v379_v47 = vsel %vm326_vm1, 0.0, %v378_v40  ;;  %v382_v55 = vmul.f32 0.35355338, %v357_v38  ;;  %v680_v38 = vshrl.u32 %v679_v37, 7  ;;  %v682_v39 = vand.u32 127, %v679_v37 }
 0x13d   : > { %v376_v46 = vrot.slane %v361_v42, 4  ;;  %v381_v48 = vsel %vm326_vm1, 0.0, %v380_v44  ;;  %v384_v49 = vmul.f32 0.35355338, %v361_v42  ;;  %v402_v52 = vrot.slane %v388_v45, 4 }
 0x13e   : > { %v389_v51 = vmul.f32 0.35355338, %v381_v48  ;;  %v375_v53 = vsel %vm326_vm1, 0.0, %v374_v43  ;;  %v387_v57 = vmul.f32 0.35355338, %v379_v47  ;;  %vm683_vm3 = vcmp.le.s32.totalorder %v682_v39, %v680_v38 }
 0x13f   : > { %v377_v54 = vsel %vm326_vm1, 0.0, %v376_v46  ;;  %v390_v56 = vrot.slane %v384_v49, 4  ;;  %v403_v60 = vsel %vm326_vm1, %v402_v52, %v386_v50  ;;  %v383_v63 = vmul.f32 0.35355338, %v375_v53 }
 0x140   : > { %v408_v58 = vrot.slane %v389_v51, 4  ;;  %v385_v59 = vmul.f32 0.35355338, %v377_v54  ;;  %v407_v62 = vperm.slane %v403_v60, %v1918_v14  ;;  %vm691_vm4 = vcmp.eq.s32.totalorder %v682_v39, 0 }
 0x141   : > { %v391_v61 = vsel %vm326_vm1, %v390_v56, %v382_v55  ;;  %vm1465_vm5 = vcmp.ne.s32.totalorder %v682_v39, %v680_v38  ;;  %vm695_vm6 = vcmp.lt.s32.totalorder %v682_v39, %v680_v38  ;;  %v1750_v45 = vmov 0.0  }
 0x142   : > { %v395_v0 = vperm.slane %v391_v61, %v1918_v14  ;;  %v396_v1 = vrot.slane %v385_v59, 4  ;;  %v409_v2 = vsel %vm326_vm1, %v408_v58, %v387_v57  ;;  %v428_v4 = vrot.slane %v407_v62, 4 }
 0x143   : > { %v413_v3 = vperm.slane %v409_v2, %v1918_v14  ;;  %v1436_v46 = vsel %vm695_vm6, 1.0, %v1750_v45 }
 0x144   : > { %v397_v5 = vsel %vm326_vm1, %v396_v1, %v383_v63  ;;  %v416_v7 = vrot.slane %v395_v0, 4 }
 0x145   : > { %v401_v8 = vperm.slane %v397_v5, %v1918_v14  ;;  %v426_v9 = vrot.slane %v413_v3, 4  ;;  %v429_v12 = vsel %vm326_vm1, %v413_v3, %v428_v4 }
 0x146   : > { %v437_v13 = vperm.slane %v429_v12, %v1929_v24 }
 0x147   : > { %v414_v15 = vrot.slane %v401_v8, 4  ;;  %v417_v16 = vsel %vm326_vm1, %v401_v8, %v416_v7  ;;  %v427_v20 = vsel %vm326_vm1, %v426_v9, %v407_v62 }
 0x148   : > { %v425_v17 = vperm.slane %v417_v16, %v1929_v24  ;;  %v442_v18 = vrot.slane %v437_v13, 4  ;;  %v433_v26 = vperm.slane %v427_v20, %v1929_v24 }
 0x149   : > { %v415_v19 = vsel %vm326_vm1, %v414_v15, %v395_v0 }
 0x14a   : > { %v421_v21 = vperm.slane %v415_v19, %v1929_v24  ;;  %v443_v22 = vsel %vm326_vm1, %v442_v18, %v425_v17  ;;  %v444_v25 = vrot.slane %v425_v17, 4  ;;  %v438_v31 = vrot.slane %v433_v26, 4 }
 0x14c   : > { %v440_v27 = vrot.slane %v421_v21, 4  ;;  %v445_v28 = vsel %vm326_vm1, %v437_v13, %v444_v25  ;;  %v439_v33 = vsel %vm326_vm1, %v438_v31, %v421_v21 }
 0x14e   : > { %v441_v29 = vsel %vm326_vm1, %v433_v26, %v440_v27 }
 0x19c   : > { %448 = vrot.lane.b32.xlu2 %v1912_v11, %s1746_s10  ;;  %s1321_s10 = sshll.u32 %s1317_s13, 4  ;;  %s1322_s10 = int_to_ptr.hbm [resolvable:$true] %s1321_s10 }
 0x19d   : > { %v453_v35 = vpop.permute.xlu1 %452  ;;  %s1682_s11 = sshra.s32 %s1322_s10, 4  ;;  %s1683_s11 = int_to_ptr.hbm [resolvable:$true] %s1682_s11 }
 0x19e   : > { %p1689_p12 = scmp.lt.s32.totalorder %s1683_s11, %s2089_s5 }
 0x1a5   : > { %v451_v30 = vpop.permute.xlu0 %450 }
 0x1a6   : > { %522 = vxpose.xlu1.b32.start.end [1/1] (short) (narrow) %v451_v30, 8 }
 0x1cc   : > { %v474_v32 = vpop.trf.xlu2 }
 0x1cd   : > { %605 = vmatpush.msra.mxu1 %v474_v32 }
 0x1ce   : > { %1432 = vmatmul.msk.f32.vlgmr.msra.gmra.mxu1 %vm586_vm2, %v439_v33 }
 0x1f6   : > { %v449_v34 = vpop.permute.xlu2 %448 }
 0x1f7   : > { %490 = vxpose.xlu0.b32.start.end [1/1] (short) (narrow) %v449_v34, 8 }
 0x1ff   : > { %554 = vxpose.xlu0.b32.start.end [1/1] (short) (narrow) %v453_v35, 8 }
 0x24a   : > { %v538_v36 = vpop.trf.xlu1 }
 0x24b   : > { %651 = vmatpush.msra.mxu3 %v538_v36  ;;  %v607_v40 = vpop.f32.mrf.mxu1 }
 0x24c   : > { %1434 = vmatmul.msk.f32.vlgmr.msra.gmra.mxu3 %vm586_vm2, %v443_v22  ;;  %v686_v41 = vsel %vm683_vm3, %v607_v40, -inf }
 0x24d   : > { %v690_v42 = vmax.f32 %v686_v41, 0.0 }
 0x24f   : > { %v692_v44 = vsel %vm691_vm4, 0.0, %v690_v42 }
 0x29b   : > { %v506_v43 = vpop.trf.xlu0 }
 0x29c   : > { %628 = vmatpush.msra.mxu2 %v506_v43 }
 0x29d   : > { %1433 = vmatmul.msk.f32.vlgmr.msra.gmra.mxu2 %vm586_vm2, %v441_v29 }
 0x29e   : > { %1438 = vmatpush.msk.msrb.mxu2 %vm1465_vm5, %v692_v44 }
 0x2a3   : > { %v570_v47 = vpop.trf.xlu0 }
 0x2a4   : > { %674 = vmatpush.msrb.mxu1 %v570_v47 }
 0x2a5   : > { %1435 = vmatmul.msk.f32.vlgmr.msrb.gmra.mxu1 %vm586_vm2, %v445_v28  ;;  %1439 = vmatmul.msk.f32.vlgmr.msrb.gmra.mxu2 %vm586_vm2, %v1436_v46 }
 0x2cf   : > { %v653_v49 = vpop.f32.mrf.mxu3 }
 0x2d0   : > { %v688_v51 = vsel %vm683_vm3, %v653_v49, -inf }
 0x320   : > { %v630_v48 = vpop.f32.mrf.mxu2 }
 0x321   : > { %v687_v60 = vsel %vm683_vm3, %v630_v48, -inf }
 0x322   : > { %v676_v50 = vpop.f32.mrf.mxu1 }
 0x323   : > { %v689_v52 = vsel %vm683_vm3, %v676_v50, -inf }
 0x328   : > { %v718_v53 = vpop.f32.mrf.mxu2 }
 0x329   : > { %v723_v54 = vsub.f32 %v688_v51, %v718_v53  ;;  %v721_v55 = vsub.f32 %v686_v41, %v718_v53  ;;  %v724_v56 = vsub.f32 %v689_v52, %v718_v53  ;;  %v722_v61 = vsub.f32 %v687_v60, %v718_v53 }
 0x32b   : > { %v731_v57 = vsel %vm586_vm2, %v723_v54, -inf  ;;  %v725_v58 = vsel %vm586_vm2, %v721_v55, -inf  ;;  %v734_v59 = vsel %vm586_vm2, %v724_v56, -inf  ;;  %v728_v62 = vsel %vm586_vm2, %v722_v61, -inf }
 0x32c   : > { %732 = vmax.xlane.f32.xlu1 %v731_v57  ;;  %726 = vmax.xlane.f32.xlu0 %v725_v58 }
 0x32d   : > { %735 = vmax.xlane.f32.xlu2 %v734_v59 }
 0x335   : > { %729 = vmax.xlane.f32.xlu2 %v728_v62 }
 0x340   : > { %773 = vrot.lane.b32.xlu0 %v1927_v23, %s1751_s14 }
 0x345   : > { %775 = vrot.lane.b32.xlu1 %v1910_v10, %s1751_s14 }
 0x34d   : > { %769 = vrot.lane.b32.xlu2 %v1903_v6, %s1751_s14  ;;  %771 = vrot.lane.b32.xlu1 %v1912_v11, %s1751_s14  ;;  %s1684_s14 = scalar_lea.hbm %s1683_s11, 8 }
 0x34e   : > { %p1685_p1 = scmp.ne.s32.totalorder %s1683_s11, %s1684_s14  ;;  %p1690_p7 = scmp.lt.s32.totalorder %s1688_s6, %s1684_s14 }
 0x350   : > { %p1686_p3 = pnand %p1685_p1, %p1854_p4  ;;  %p1691_p8 = por %p1690_p7, %p1689_p12 }
 0x352   : > { %p1687_p5 = pneg %p1686_p3 }
 0x354   : > { %p1692_p9 = pnand %p1691_p8, %p1687_p5 }
 0x39f   : > { %v733_v63 = vpop.xlane.xlu1 %732  ;;  %v727_v0 = vpop.xlane.xlu0 %726 }
 0x3a0   : > { %v739_v1 = vsub.f32 %v723_v54, %v733_v63  ;;  %v737_v2 = vsub.f32 %v721_v55, %v727_v0  ;;  %v736_v3 = vpop.xlane.xlu2 %735 }
 0x3a1   : > { %v740_v4 = vsub.f32 %v724_v56, %v736_v3 }
 0x3a2   : > { %v745_v5 = vmul.f32 1.442695, %v739_v1  ;;  %v741_v7 = vmul.f32 1.442695, %v737_v2 }
 0x3a3   : > { %v747_v8 = vmul.f32 1.442695, %v740_v4 }
 0x3a4   : > { %1562 = vpow2.f32 %v745_v5 }
 0x3a5   : > { %1564 = vpow2.f32 %v741_v7 }
 0x3a6   : > { %1566 = vpow2.f32 %v747_v8 }
 0x3a8   : > { %v730_v9 = vpop.xlane.xlu2 %729 }
 0x3a9   : > { %v738_v23 = vsub.f32 %v722_v61, %v730_v9 }
 0x3aa   : > { %v1563_v12 = vpop.eup %1562 }
 0x3ab   : > { %v1565_v10 = vpop.eup %1564  ;;  %v743_v13 = vmul.f32 1.442695, %v738_v23  ;;  %v755_v6 = vsel %vm586_vm2, %v1563_v12, 0.0 }
 0x3ac   : > { %v1567_v11 = vpop.eup %1566  ;;  %v749_v15 = vsel %vm586_vm2, %v1565_v10, 0.0  ;;  %756 = vadd.xlane.f32.xlu2 %v755_v6 }
 0x3ad   : > { %1568 = vpow2.f32 %v743_v13  ;;  %750 = vadd.xlane.f32.xlu1 %v749_v15  ;;  %v758_v16 = vsel %vm586_vm2, %v1567_v11, 0.0 }
 0x3ae   : > { %759 = vadd.xlane.f32.xlu0 %v758_v16 }
 0x3b0   : > { %v770_v20 = vpop.permute.xlu2 %769 }
 0x3b2   : > { %v774_v21 = vpop.permute.xlu0 %773 }
 0x3b3   : > { %v1569_v17 = vpop.eup %1568 }
 0x3b4   : > { %v752_v18 = vsel %vm586_vm2, %v1569_v17, 0.0 }
 0x3b5   : > { %753 = vadd.xlane.f32.xlu1 %v752_v18 }
 0x3b7   : > { %v776_v19 = vpop.permute.xlu1 %775 }
 0x3bf   : > { %v772_v22 = vpop.permute.xlu1 %771 }
 0x3d5   : > { %781 = vxpose.xlu2.b32.start.end [1/1] (short) (narrow) %v770_v20, 8 }
 0x3d7   : > { %845 = vxpose.xlu0.b32.start.end [1/1] (short) (narrow) %v774_v21, 8 }
 0x3dd   : > { %813 = vxpose.xlu2.b32.start.end [1/1] (short) (narrow) %v772_v22, 8 }
 0x3ef   : > { %877 = vxpose.xlu1.b32.start.end [1/1] (short) (narrow) %v776_v19, 8 }
 0x41f   : > { %v757_v25 = vpop.xlane.xlu2 %756 }
 0x420   : > { %v751_v26 = vpop.xlane.xlu1 %750  ;;  %1570 = vrcp.f32 %v757_v25 }
 0x421   : > { %1572 = vrcp.f32 %v751_v26  ;;  %v760_v27 = vpop.xlane.xlu0 %759 }
 0x422   : > { %1574 = vrcp.f32 %v760_v27 }
 0x426   : > { %v1571_v28 = vpop.eup %1570 }
 0x427   : > { %v1573_v29 = vpop.eup %1572  ;;  %v767_v30 = vmul.f32 %v1571_v28, %v1563_v12 }
 0x428   : > { %v1575_v31 = vpop.eup %1574  ;;  %v754_v32 = vpop.xlane.xlu1 %753  ;;  %v765_v33 = vmul.f32 %v1573_v29, %v1565_v10 }
 0x429   : > { %v768_v34 = vmul.f32 %v1575_v31, %v1567_v11  ;;  %1576 = vrcp.f32 %v754_v32  ;;  %1444 = vmatpush.xpose.msk.msra.mxu2 %vm586_vm2, %v767_v30 }
 0x42a   : > { %1440 = vmatpush.xpose.msk.msrb.mxu3 %vm586_vm2, %v765_v33 }
 0x42e   : > { %1446 = vmatpush.xpose.msk.msra.mxu3 %vm586_vm2, %v768_v34 }
 0x42f   : > { %v1577_v35 = vpop.eup %1576 }
 0x430   : > { %v766_v36 = vmul.f32 %v1577_v35, %v1569_v17 }
 0x432   : > { %1442 = vmatpush.xpose.msk.msra.mxu1 %vm586_vm2, %v766_v36 }
 0x46e   : > { %v797_v37 = vpop.trf.xlu2 }
 0x46f   : > { %1441 = vmatmul.msk.f32.vlgmr.msrb.gmra.mxu3 %vm586_vm2, %v797_v37 }
 0x476   : > { %v829_v38 = vpop.trf.xlu2 }
 0x477   : > { %1443 = vmatmul.msk.f32.vlgmr.msra.gmra.mxu1 %vm586_vm2, %v829_v38 }
 0x47b   : > { %v861_v39 = vpop.trf.xlu0 }
 0x47c   : > { %1445 = vmatmul.msk.f32.vlgmr.msra.gmra.mxu2 %vm586_vm2, %v861_v39 }
 0x493   : > { %v893_v40 = vpop.trf.xlu1 }
 0x494   : > { %1447 = vmatmul.msk.f32.vlgmr.msra.gmra.mxu3 %vm586_vm2, %v893_v40 }
 0x4f2   : > { %v932_v41 = vpop.f32.mrf.mxu3 }
 0x4f4   : > { %v958_v44 = vpop.f32.mrf.mxu1 }
 0x4ff   : > { %v984_v42 = vpop.f32.mrf.mxu2 }
 0x500   : > { %v1546_v43 = vpack.i.bf16 %v932_v41, %v984_v42 }
 0x502   : > { %1547 = vxpose.xlu2.b32.start.end [1/1] (short) (narrow) %v1546_v43, 8 }
 0x517   : > { %v1010_v45 = vpop.f32.mrf.mxu3 }
 0x518   : > { %v1553_v46 = vpack.i.bf16 %v958_v44, %v1010_v45 }
 0x51a   : > { %1554 = vxpose.xlu0.b32.start.end [1/1] (short) (narrow) %v1553_v46, 8 }
 0x59b   : > { %v1548_v47 = vpop.trf.xlu2 }
 0x59c   : > { %v1552_v48 = vunpack.i.h.bf16 %v1548_v47  ;;  %v1549_v49 = vunpack.i.l.bf16 %v1548_v47 }
 0x59e   : > { %v1143_v50 = vrot.slane %v1552_v48, 4  ;;  %v1141_v51 = vrot.slane %v1549_v49, 4 }
 0x5a0   : > { %v1142_v52 = vsel %vm326_vm1, %v1141_v51, %v1552_v48  ;;  %v1144_v53 = vsel %vm326_vm1, %v1549_v49, %v1143_v50 }
 0x5a1   : > { %v1148_v57 = vperm.slane %v1142_v52, %v1918_v14  ;;  %v1152_v58 = vperm.slane %v1144_v53, %v1918_v14  ;;  %v1464_v52 = vld [vmem:[#allocation7 + $0x8] sm:$0xff] }
 0x5a2   : > { %1298 = vmatpush.bf16.msrb.mxu0 %v1464_v52 }
 0x5a3   : > { %v1167_v63 = vrot.slane %v1148_v57, 4  ;;  %v1179_v0 = vrot.slane %v1152_v58, 4 }
 0x5be   : > { %v1555_v54 = vpop.trf.xlu0 }
 0x5bf   : > { %v1559_v55 = vunpack.i.h.bf16 %v1555_v54  ;;  %v1556_v56 = vunpack.i.l.bf16 %v1555_v54 }
 0x5c1   : > { %v1155_v59 = vrot.slane %v1559_v55, 4  ;;  %v1153_v60 = vrot.slane %v1556_v56, 4 }
 0x5c3   : > { %v1154_v61 = vsel %vm326_vm1, %v1153_v60, %v1559_v55  ;;  %v1156_v62 = vsel %vm326_vm1, %v1556_v56, %v1155_v59  ;;  %v1561_v60 = vld [vmem:[%s2088_s4] ss:$0 sm:$0xff] }
 0x5c4   : > { %v1160_v1 = vperm.slane %v1154_v61, %v1918_v14  ;;  %v1164_v2 = vperm.slane %v1156_v62, %v1918_v14 }
 0x5c6   : > { %v1165_v3 = vrot.slane %v1160_v1, 4  ;;  %v1168_v4 = vsel %vm326_vm1, %v1160_v1, %v1167_v63  ;;  %v1177_v5 = vrot.slane %v1164_v2, 4  ;;  %v1180_v7 = vsel %vm326_vm1, %v1164_v2, %v1179_v0 }
 0x5c7   : > { %v1176_v8 = vperm.slane %v1168_v4, %v1929_v24  ;;  %v1188_v9 = vperm.slane %v1180_v7, %v1929_v24 }
 0x5c8   : > { %v1166_v23 = vsel %vm326_vm1, %v1165_v3, %v1148_v57  ;;  %v1178_v12 = vsel %vm326_vm1, %v1177_v5, %v1152_v58 }
 0x5c9   : > { %v1172_v10 = vperm.slane %v1166_v23, %v1929_v24  ;;  %v1184_v13 = vperm.slane %v1178_v12, %v1929_v24  ;;  %v1191_v6 = vrot.slane %v1176_v8, 4  ;;  %v1195_v11 = vrot.slane %v1188_v9, 4 }
 0x5cb   : > { %v1192_v15 = vsel %vm326_vm1, 0.0, %v1191_v6  ;;  %v1189_v16 = vrot.slane %v1172_v10, 4  ;;  %v1193_v17 = vrot.slane %v1184_v13, 4  ;;  %v1196_v18 = vsel %vm326_vm1, 0.0, %v1195_v11 }
 0x5cc   : > { %v1197_v19 = vsel %vm326_vm1, %v1191_v6, %v1172_v10  ;;  %v1202_v20 = vrot.slane %v1192_v15, 4  ;;  %v1208_v21 = vsel %vm326_vm1, %v1195_v11, %v1184_v13  ;;  %v1213_v22 = vrot.slane %v1196_v18, 4 }
 0x5cd   : > { %v1190_v25 = vsel %vm326_vm1, 0.0, %v1189_v16  ;;  %v1194_v26 = vsel %vm326_vm1, 0.0, %v1193_v17  ;;  %v1201_v27 = vperm.slane %v1197_v19, %v1918_v14  ;;  %v1212_v28 = vperm.slane %v1208_v21, %v1918_v14 }
 0x5ce   : > { %v1203_v29 = vsel %vm326_vm1, %v1202_v20, %v1190_v25  ;;  %v1214_v30 = vsel %vm326_vm1, %v1213_v22, %v1194_v26 }
 0x5cf   : > { %v1207_v31 = vperm.slane %v1203_v29, %v1918_v14  ;;  %v1218_v32 = vperm.slane %v1214_v30, %v1918_v14  ;;  %v1221_v33 = vrot.slane %v1201_v27, 4  ;;  %v1233_v34 = vrot.slane %v1212_v28, 4 }
 0x5d1   : > { %v1222_v35 = vsel %vm326_vm1, %v1207_v31, %v1221_v33  ;;  %v1234_v36 = vsel %vm326_vm1, %v1218_v32, %v1233_v34  ;;  %v1219_v37 = vrot.slane %v1207_v31, 4  ;;  %v1231_v38 = vrot.slane %v1218_v32, 4 }
 0x5d2   : > { %v1230_v39 = vperm.slane %v1222_v35, %v1929_v24  ;;  %v1242_v40 = vperm.slane %v1234_v36, %v1929_v24 }
 0x5d3   : > { %v1220_v41 = vsel %vm326_vm1, %v1219_v37, %v1201_v27  ;;  %v1232_v42 = vsel %vm326_vm1, %v1231_v38, %v1212_v28 }
 0x5d4   : > { %v1249_v43 = vrot.slane %v1230_v39, 4  ;;  %v1247_v44 = vrot.slane %v1242_v40, 4  ;;  %v1226_v14 = vperm.slane %v1220_v41, %v1929_v24  ;;  %v1238_v45 = vperm.slane %v1232_v42, %v1929_v24  ;;  %v1463_v24 = vld [vmem:[#allocation7] sm:$0xff] }
 0x5d5   : > { %1299 = vmatpush.bf16.msrb.mxu0 %v1463_v24 }
 0x5d6   : > { %v1250_v46 = vsel %vm326_vm1, %v1242_v40, %v1249_v43  ;;  %v1248_v47 = vsel %vm326_vm1, %v1247_v44, %v1230_v39  ;;  %v1243_v48 = vrot.slane %v1238_v45, 4  ;;  %v1245_v49 = vrot.slane %v1226_v14, 4 }
 0x5d7   : > { %1260 = vrot.lane.b32.xlu1 %v1250_v46, %s1752_s27  ;;  %1256 = vrot.lane.b32.xlu0 %v1248_v47, %s1753_s28 }
 0x5d8   : > { %v1246_v50 = vsel %vm326_vm1, %v1238_v45, %v1245_v49  ;;  %v1244_v51 = vsel %vm326_vm1, %v1243_v48, %v1226_v14 }
 0x5d9   : > { %1252 = vrot.lane.b32.xlu2 %v1246_v50, %s1754_s29 }
 0x633   : > { %v1253_v53 = vpop.permute.xlu2 %1252 }
 0x634   : > { %v1263_v54 = vsel %vm586_vm2, %v1244_v51, %v1253_v53 }
 0x649   : > { %v1261_v55 = vpop.permute.xlu1 %1260  ;;  %v1257_v56 = vpop.permute.xlu0 %1256 }
 0x64a   : > { %v1265_v57 = vsel %vm1264_vm7, %v1263_v54, %v1257_v56 }
 0x64b   : > { %v1267_v58 = vsel %vm1266_vm8, %v1265_v57, %v1261_v55 }
 0x64c   : > { %v1268_v59 = vpack.c.bf16 %v1267_v58, %v1267_v58 }
 0x64e   : > { %1456 = vmatmul.msk.bf16.vlgmr.msrb.gmra.mxu0 %vm298_vm0, %v1268_v59 }
 0x6cb   : > { %v1301_v61 = vpop.f32.mrf.mxu0 }
 0x6cc   : > { %v1302_v62 = vadd.f32 %v1561_v60, %v1301_v61 }
 0x6ce   : > { %1305 = vst.msk [vmem:[%s274_s17] sm:$0xff] %vm298_vm0, %v1302_v62 }
 0x6cf   : > { %1695 = shalt.err (!%p1692_p9)
}
 0x6d0   : > { %1476 = dma.vmem_to_hbm [thread:$0]  (%p1854_p4), %s1320_s9, 128, %s1322_s10, %s1307_s25  }
 0x6d3   : > { %v1303_v63 = vpop.f32.mrf.mxu0 }
 0x6d4 PF: > { %s1333_s22 = sand.u32 1, %s1726_s18   ;;  %p2096_p10 = scmp.ge.s32.totalorder %s1738_s21, 2 }
 0x6d5   : > { %s1334_s16 = scalar_lea.sflag [#allocation4], %s1333_s22 }
 0x6d6   : > { %p1490_p13 = pnand %p2096_p10, %p1858_p6 }
 0x6d8   : > { %p1491_p11 = pneg %p1490_p13 }
 0x6da   : > { %1721 = dma.done.wait (%p1491_p11), %s1334_s16, 128  }
 0x6db   : > { %1723 = vsyncadd (%p1491_p11), %s1334_s16, 4294967168  ;;  %p19_p0 = scmp.ge.s32.totalorder %s1828_s12, 4   ;;  %s2097_s18 = smov %s1730_s19 }
 0x6dc   : > { %s2098_s19 = smov %s1734_s20  ;;  %s2099_s20 = smov %s1839_s15 }
 0x6dd   : > { %s2100_s21 = smov %s1828_s12  ;;  %21 = sbr.rel (!%p19_p0) target bundleno = 6 (0x6), region = 93 }
 0x6e2   :  { %1340 = vsyncpa [#allocation3], 1 }
 0x6e3   :  { %1342 = vsyncpa [#allocation3 + $0x1], 1 }
 0x6e4   :  { %1343 = vsyncpa [#allocation6], 1 }
 0x6e5   :  { %1344 = vsyncpa [#allocation4], 1 }
 0x6e6   :  { %1346 = vsyncpa [#allocation4 + $0x1], 1 }

</bundles_post_ra>
